<compile_context>
chip_gen: v6e
topology: v6e:2x2x1
jax: 0.10.0
libtpu: 0.0.40
codegen_flags: <defaults>
</compile_context>

<pallas_src>
import functools

import numpy as np

import jax
import jax.numpy as jnp
from jax import lax
from jax.experimental import pallas as pl
from jax.experimental.pallas import tpu as pltpu


_NEG = -3.0e38  # "minus infinity" for row masking / top-k register init


def _round_up(x, m):
    return (x + m - 1) // m * m


@functools.lru_cache(maxsize=1)
def _roll_sign():
    """Probe pltpu.roll's sublane-roll direction on this backend.

    Returns +1 if pltpu.roll(x, s, axis=0) == jnp.roll(x, s, axis=0),
    -1 if it rolls the opposite way, 0 if the sublane roll is unavailable
    (then the kernel falls back to slice+concat shifts).
    """
    def k(x_ref, o_ref):
        o_ref[...] = pltpu.roll(x_ref[...], shift=1, axis=0)

    x = np.arange(16 * 128, dtype=np.float32).reshape(16, 128)
    try:
        y = pl.pallas_call(
            k, out_shape=jax.ShapeDtypeStruct((16, 128), jnp.float32)
        )(jnp.asarray(x))
        y = np.asarray(jax.block_until_ready(y))
    except Exception:
        return 0
    if np.array_equal(y, np.roll(x, 1, axis=0)):
        return 1
    if np.array_equal(y, np.roll(x, -1, axis=0)):
        return -1
    return 0


def _shift_rows_up(y, t, roll_sign):
    """result[j] = y[j + t] (rows wrap at the end; callers mask wrapped rows)."""
    if t == 0:
        return y
    n = y.shape[0]
    if roll_sign != 0:
        return pltpu.roll(y, shift=(-t * roll_sign) % n, axis=0)
    # fallback: two static slices + concat (semantically identical)
    return jnp.concatenate([y[t:], y[:t]], axis=0)


def _fused_conv_topk_kernel(x_ref, w_ref, b_ref, lim_ref, o_ref, vals_ref, *,
                            ks_max, top_k, bt, l_pad, c_pad, roll_sign):
    """One batch block: fused multi-kernel-size Conv1d + ReLU + top-k.

    x_ref  : (bt*l_pad, C_in)  bf16   (zero-padded, batch folded into rows)
    w_ref  : (ks_max, C_in, c_pad) bf16 (tap-aligned fused weights)
    b_ref  : (1, c_pad) f32            lim_ref: (1, c_pad) i32 (valid rows/channel)
    o_ref  : (bt, top_k, c_pad) f32    vals_ref: VMEM scratch (bt, l_pad, c_pad) f32
    """
    m_rows = bt * l_pad

    # ---- fused Conv1d: ks_max shifted MXU matmuls, f32 accumulation ----------
    xm = x_ref[...]                                          # bf16 (m_rows, C_in)
    acc = jnp.zeros((m_rows, c_pad), jnp.float32)
    for t in range(ks_max):                                  # small static tap loop
        y = jnp.dot(xm, w_ref[t], preferred_element_type=jnp.float32)
        acc = acc + _shift_rows_up(y, t, roll_sign)          # shift on XLU, not slices
    acc = jnp.maximum(acc + b_ref[...], 0.0)                 # bias + ReLU (f32, VPU)

    # ---- mask rows past each conv's true output length, park in VMEM --------
    vals = acc.reshape(bt, l_pad, c_pad)
    row = lax.broadcasted_iota(jnp.int32, (bt, l_pad, c_pad), 1)
    lim = lim_ref[...].reshape(1, 1, c_pad)
    vals_ref[...] = jnp.where(row < lim, vals, _NEG)

    # ---- values-only top-k: sorted running registers, max/min only ----------
    def insert_chunk(j, regs):
        start = pl.multiple_of(j * 8, 8)
        chunk = vals_ref[:, pl.ds(start, 8), :]              # (bt, 8, c_pad)
        for r in range(8):
            v = chunk[:, r:r + 1, :]                         # (bt, 1, c_pad)
            new_regs = []
            for m in regs:                                   # bubble v into sorted regs
                new_regs.append(jnp.maximum(m, v))
                v = jnp.minimum(m, v)
            regs = tuple(new_regs)
        return regs

    init = tuple(jnp.full((bt, 1, c_pad), _NEG, jnp.float32) for _ in range(top_k))
    regs = lax.fori_loop(0, l_pad // 8, insert_chunk, init)

    # lane-dense store: channels on the 128-lane axis
    o_ref[...] = jnp.concatenate(regs, axis=1).astype(o_ref.dtype)


def _build_fused_params(params, kernel_sizes, hidden_dim, num_kernel):
    """Tap-align per-conv weights into one (ks_max, C_in, C_pad) bf16 tensor."""
    ks_max = max(kernel_sizes)
    pad_max = ks_max // 2
    n_conv = len(kernel_sizes)
    c_pad = _round_up(max(n_conv * num_kernel, 1), 128)      # lane-dense channel dim
    w_f = np.zeros((ks_max, hidden_dim, c_pad), np.float32)
    b_f = np.zeros((1, c_pad), np.float32)
    for c, ((w, b), ks) in enumerate(zip(params, kernel_sizes)):
        off = pad_max - ks // 2                              # aligns torch padding=ks//2
        sl = slice(c * num_kernel, (c + 1) * num_kernel)
        w_f[off:off + ks, :, sl] = np.asarray(w)
        b_f[0, sl] = np.asarray(b)
    return jnp.asarray(w_f, jnp.bfloat16), jnp.asarray(b_f, jnp.float32), c_pad


@functools.partial(jax.jit, static_argnames=(
    "kernel_sizes", "num_kernel", "top_k", "block_b", "roll_sign"))
def fused_conv_relu_topk(x, w_fused, b_fused, *, kernel_sizes, num_kernel,
                         top_k, block_b=8, roll_sign=0):
    """x: (B, L, C_in) f32 -> list of (B, 1, num_kernel*top_k), one per kernel size."""
    B, L, C_in = x.shape
    ks_max, _, c_pad = w_fused.shape
    pad_max = ks_max // 2
    n_conv = len(kernel_sizes)

    l_outs = [L + 2 * (ks // 2) - ks + 1 for ks in kernel_sizes]  # torch Conv1d lengths
    if top_k > min(l_outs):
        raise ValueError("top_k larger than conv output length (torch.topk would fail)")

    # fused row space: longest conv output + tap reach, rounded so bf16/f32
    # sublane tiles and the 8-row top-k chunks stay aligned
    l_pad = _round_up(max(l_outs) + ks_max - 1, 16)
    bt = max(1, min(block_b, B))                             # batch rows per grid step
    b_pad = _round_up(B, bt)

    # single zero-pad + bf16 cast + 2-D reshape of the activation (one HBM copy,
    # shared by all kernel sizes).
    # TODO(synk): padding could be done fully in-kernel via a VMEM scratch to
    # avoid even this one copy; kept wrapper-side for simplicity.
    xp = jnp.pad(x, ((0, b_pad - B), (pad_max, l_pad - L - pad_max), (0, 0)))
    x2 = xp.astype(jnp.bfloat16).reshape(b_pad * l_pad, C_in)

    # per-output-channel valid row count (0 for lane-padding channels)
    lim = np.zeros((1, c_pad), np.int32)
    for c, lo in enumerate(l_outs):
        lim[0, c * num_kernel:(c + 1) * num_kernel] = lo
    lim = jnp.asarray(lim)

    kernel = functools.partial(
        _fused_conv_topk_kernel, ks_max=ks_max, top_k=top_k, bt=bt,
        l_pad=l_pad, c_pad=c_pad, roll_sign=roll_sign)

    m_blk = bt * l_pad
    flops = 2 * b_pad * l_pad * C_in * c_pad * ks_max
    bytes_accessed = (x2.size * 2 + w_fused.size * 2 + b_fused.size * 4 +
                      lim.size * 4 + b_pad * top_k * c_pad * 4)
    vmem_est = (2 * (m_blk * C_in * 2 + w_fused.size * 2 + 2 * c_pad * 4 +
                     bt * top_k * c_pad * 4) + bt * l_pad * c_pad * 4)
    vmem_limit = int(min(max(2 * vmem_est, 8 * 2 ** 20), 48 * 2 ** 20))

    out = pl.pallas_call(
        kernel,
        out_shape=jax.ShapeDtypeStruct((b_pad, top_k, c_pad), jnp.float32),
        grid_spec=pltpu.PrefetchScalarGridSpec(
            num_scalar_prefetch=0,
            grid=(b_pad // bt,),
            in_specs=[
                pl.BlockSpec((m_blk, C_in), lambda i: (i, 0)),
                pl.BlockSpec((ks_max, C_in, c_pad), lambda i: (0, 0, 0)),
                pl.BlockSpec((1, c_pad), lambda i: (0, 0)),
                pl.BlockSpec((1, c_pad), lambda i: (0, 0)),
            ],
            out_specs=pl.BlockSpec((bt, top_k, c_pad), lambda i: (i, 0, 0)),
            scratch_shapes=[pltpu.VMEM((bt, l_pad, c_pad), jnp.float32)],
        ),
        compiler_params=pltpu.CompilerParams(
            dimension_semantics=("parallel",),       # batch axis -> both v7x TCs
            vmem_limit_bytes=vmem_limit),
        cost_estimate=pl.CostEstimate(flops=int(flops), transcendentals=0,
                                      bytes_accessed=int(bytes_accessed)),
    )(x2, w_fused, b_fused, lim)

    # back to torch layout: per conv, (B, C_out, top_k).view(B, -1).unsqueeze(1)
    out = out[:B]                                            # (B, top_k, c_pad)
    results = []
    for c in range(n_conv):
        sub = out[:, :, c * num_kernel:(c + 1) * num_kernel]  # (B, top_k, nk)
        results.append(jnp.swapaxes(sub, 1, 2).reshape(B, 1, num_kernel * top_k))
    return results


class TextEncoderPallas:
    """Pallas port of TextEncoder.forward (CNN + top-k max pooling head)."""

    # TODO(synk): self.bert and self.dropout exist in the torch __init__ but are
    # never used in forward(), so they are intentionally not implemented.

    def __init__(self, hidden_dim, num_kernel, kernel_sizes, top_k, key, block_b=8):
        self.hidden_dim = int(hidden_dim)
        self.num_kernel = int(num_kernel)
        self.kernel_sizes = tuple(int(k) for k in kernel_sizes)
        self.top_k = int(top_k)
        self.block_b = int(block_b)
        self.params = []
        for i, ks in enumerate(self.kernel_sizes):
            kw, kb = jax.random.split(jax.random.fold_in(key, i))
            bound = 1.0 / float(hidden_dim * ks) ** 0.5      # torch Conv1d default init
            w = jax.random.uniform(kw, (ks, hidden_dim, num_kernel),
                                   jnp.float32, -bound, bound)
            b = jax.random.uniform(kb, (num_kernel,), jnp.float32, -bound, bound)
            self.params.append((w, b))
        self.w_fused, self.b_fused, self.c_pad = _build_fused_params(
            self.params, self.kernel_sizes, self.hidden_dim, self.num_kernel)
        self.roll_sign = _roll_sign()                        # probe once, outside jit

    def __call__(self, x):
        """x: (B, L, hidden) f32 (channels-last). Returns list of (B, 1, C_out*top_k)."""
        return fused_conv_relu_topk(
            x, self.w_fused, self.b_fused,
            kernel_sizes=self.kernel_sizes, num_kernel=self.num_kernel,
            top_k=self.top_k, block_b=self.block_b, roll_sign=self.roll_sign)


def _ref_conv_relu_topk(x, w, b, ks, top_k, compute_dtype=jnp.float32):
    """Plain-JAX reference mirroring torch Conv1d + relu + topk semantics."""
    pad = ks // 2
    l_out = x.shape[1] + 2 * pad - ks + 1
    xp = jnp.pad(x, ((0, 0), (pad, pad), (0, 0))).astype(compute_dtype)
    wc = w.astype(compute_dtype)
    acc = b.astype(jnp.float32)[None, None, :]
    for t in range(ks):
        acc = acc + jnp.einsum("blc,co->blo", xp[:, t:t + l_out, :], wc[t],
                               preferred_element_type=jnp.float32)
    conv = jax.nn.relu(acc)                                  # (B, L_out, C_out)
    vals, _ = lax.top_k(jnp.transpose(conv, (0, 2, 1)), top_k)   # (B, C_out, top_k)
    return vals


if __name__ == "__main__":
    key = jax.random.PRNGKey(0)
    B, L, H = 2, 16, 32                                      # batch, seq, hidden
    num_kernel, kernel_sizes, top_k = 8, (2, 3, 4), 4

    kx, kp = jax.random.split(key)
    # torch's forward transposes a dense float (B, L, H) activation; the BERT
    # token-id embedding is not part of the traced forward.
    x = jax.random.normal(kx, (B, L, H), jnp.float32)

    enc = TextEncoderPallas(H, num_kernel, kernel_sizes, top_k, kp)
    outs = jax.block_until_ready(enc(x))

    for (w, b), ks, o in zip(enc.params, kernel_sizes, outs):
        assert o.shape == (B, 1, num_kernel * top_k)
        # tight check vs a reference with the same bf16 input rounding as the kernel
        ref_bf16 = _ref_conv_relu_topk(
            x, w, b, ks, top_k, compute_dtype=jnp.bfloat16).reshape(B, 1, -1)
        assert jnp.allclose(o, ref_bf16, atol=2e-3, rtol=2e-3), f"bf16 ref mismatch ks={ks}"
        # loose check vs the full-f32 torch-equivalent reference
        ref_f32 = _ref_conv_relu_topk(
            x, w, b, ks, top_k, compute_dtype=jnp.float32).reshape(B, 1, -1)
        assert jnp.allclose(o, ref_f32, atol=3e-2, rtol=3e-2), f"f32 ref mismatch ks={ks}"

    print("KERNEL_OK")
</pallas_src>

<mosaic_0001>
module attributes {stable_mosaic.version = 11 : i64} {
  func.func @k(%arg0: memref<16x128xf32, #tpu.memory_space<vmem>>, %arg1: memref<16x128xf32, #tpu.memory_space<vmem>>) attributes {dimension_semantics = [], scalar_prefetch = 0 : i64, scratch_operands = 0 : i64, tpu.core_type = #tpu.core_type<tc>} {
    %c0 = arith.constant 0 : index
    %c0_0 = arith.constant 0 : index
    %0 = vector.load %arg0[%c0, %c0_0] : memref<16x128xf32, #tpu.memory_space<vmem>>, vector<16x128xf32>
    %c1_i32 = arith.constant 1 : i32
    %1 = tpu.dynamic_rotate %0 by %c1_i32 dim 0 : vector<16x128xf32>, i32 -> vector<16x128xf32>
    %c0_1 = arith.constant 0 : index
    %c0_2 = arith.constant 0 : index
    %2 = vector.load %arg1[%c0_1, %c0_2] : memref<16x128xf32, #tpu.memory_space<vmem>>, vector<16x128xf32>
    tpu.vector_store %arg1[%c0_1, %c0_2], %1 {strides = array<i32>} : memref<16x128xf32, #tpu.memory_space<vmem>>, vector<16x128xf32>,
    return
  }
}

module attributes {stable_mosaic.version = 11 : i64} {
  func.func @_fused_conv_topk_kernel(%arg0: i32, %arg1: memref<64x32xbf16, #tpu.memory_space<vmem>>, %arg2: memref<4x32x128xbf16, #tpu.memory_space<vmem>>, %arg3: memref<1x128xf32, #tpu.memory_space<vmem>>, %arg4: memref<1x128xi32, #tpu.memory_space<vmem>>, %arg5: memref<2x4x128xf32, #tpu.memory_space<vmem>>, %arg6: memref<2x32x128xf32, #tpu.memory_space<vmem>>) attributes {dimension_semantics = [#tpu.dimension_semantics<parallel>], iteration_bounds = array<i64: 1>, scalar_prefetch = 0 : i64, scratch_operands = 1 : i64, tpu.core_type = #tpu.core_type<tc>, window_params = [{transform_indices = @transform_0, window_bounds = array<i64: 64, 32>}, {pipeline_mode = #tpu.pipeline_mode<synchronous>, transform_indices = @transform_1, window_bounds = array<i64: 4, 32, 128>}, {pipeline_mode = #tpu.pipeline_mode<synchronous>, transform_indices = @transform_2, window_bounds = array<i64: 1, 128>}, {pipeline_mode = #tpu.pipeline_mode<synchronous>, transform_indices = @transform_3, window_bounds = array<i64: 1, 128>}, {transform_indices = @transform_4, window_bounds = array<i64: 2, 4, 128>}]} {
    %c0 = arith.constant 0 : index
    %c0_0 = arith.constant 0 : index
    %0 = vector.load %arg1[%c0, %c0_0] : memref<64x32xbf16, #tpu.memory_space<vmem>>, vector<64x32xbf16>
    %cst = arith.constant 0.000000e+00 : f32
    %1 = vector.broadcast %cst : f32 to vector<64x128xf32>
    %c0_1 = arith.constant 0 : index
    %c0_2 = arith.constant 0 : index
    %c0_3 = arith.constant 0 : index
    %2 = vector.load %arg2[%c0_1, %c0_2, %c0_3] : memref<4x32x128xbf16, #tpu.memory_space<vmem>>, vector<1x32x128xbf16>
    %3 = vector.shape_cast %2 : vector<1x32x128xbf16> to vector<32x128xbf16>
    %cst_4 = arith.constant dense<0.000000e+00> : vector<64x128xf32>
    %4 = tpu.matmul %0, %3, %cst_4 {dimension_numbers = #tpu.dot_dimension_numbers<[1], [0], [0], [1], [0, 0, 1, 1], [], []>} : vector<64x32xbf16>, vector<32x128xbf16>, vector<64x128xf32> -> vector<64x128xf32>
    %5 = arith.addf %1, %4 : vector<64x128xf32>
    %c1 = arith.constant 1 : index
    %c0_5 = arith.constant 0 : index
    %c0_6 = arith.constant 0 : index
    %6 = vector.load %arg2[%c1, %c0_5, %c0_6] : memref<4x32x128xbf16, #tpu.memory_space<vmem>>, vector<1x32x128xbf16>
    %7 = vector.shape_cast %6 : vector<1x32x128xbf16> to vector<32x128xbf16>
    %cst_7 = arith.constant dense<0.000000e+00> : vector<64x128xf32>
    %8 = tpu.matmul %0, %7, %cst_7 {dimension_numbers = #tpu.dot_dimension_numbers<[1], [0], [0], [1], [0, 0, 1, 1], [], []>} : vector<64x32xbf16>, vector<32x128xbf16>, vector<64x128xf32> -> vector<64x128xf32>
    %9 = vector.extract_strided_slice %8 {offsets = [1, 0], sizes = [63, 128], strides = [1, 1]} : vector<64x128xf32> to vector<63x128xf32>
    %10 = vector.extract_strided_slice %8 {offsets = [0, 0], sizes = [1, 128], strides = [1, 1]} : vector<64x128xf32> to vector<1x128xf32>
    %11 = tpu.concatenate %9, %10 in 0 : vector<63x128xf32>, vector<1x128xf32> -> vector<64x128xf32>
    %12 = arith.addf %5, %11 : vector<64x128xf32>
    %c2 = arith.constant 2 : index
    %c0_8 = arith.constant 0 : index
    %c0_9 = arith.constant 0 : index
    %13 = vector.load %arg2[%c2, %c0_8, %c0_9] : memref<4x32x128xbf16, #tpu.memory_space<vmem>>, vector<1x32x128xbf16>
    %14 = vector.shape_cast %13 : vector<1x32x128xbf16> to vector<32x128xbf16>
    %cst_10 = arith.constant dense<0.000000e+00> : vector<64x128xf32>
    %15 = tpu.matmul %0, %14, %cst_10 {dimension_numbers = #tpu.dot_dimension_numbers<[1], [0], [0], [1], [0, 0, 1, 1], [], []>} : vector<64x32xbf16>, vector<32x128xbf16>, vector<64x128xf32> -> vector<64x128xf32>
    %16 = vector.extract_strided_slice %15 {offsets = [2, 0], sizes = [62, 128], strides = [1, 1]} : vector<64x128xf32> to vector<62x128xf32>
    %17 = vector.extract_strided_slice %15 {offsets = [0, 0], sizes = [2, 128], strides = [1, 1]} : vector<64x128xf32> to vector<2x128xf32>
    %18 = tpu.concatenate %16, %17 in 0 : vector<62x128xf32>, vector<2x128xf32> -> vector<64x128xf32>
    %19 = arith.addf %12, %18 : vector<64x128xf32>
    %c3 = arith.constant 3 : index
    %c0_11 = arith.constant 0 : index
    %c0_12 = arith.constant 0 : index
    %20 = vector.load %arg2[%c3, %c0_11, %c0_12] : memref<4x32x128xbf16, #tpu.memory_space<vmem>>, vector<1x32x128xbf16>
    %21 = vector.shape_cast %20 : vector<1x32x128xbf16> to vector<32x128xbf16>
    %cst_13 = arith.constant dense<0.000000e+00> : vector<64x128xf32>
    %22 = tpu.matmul %0, %21, %cst_13 {dimension_numbers = #tpu.dot_dimension_numbers<[1], [0], [0], [1], [0, 0, 1, 1], [], []>} : vector<64x32xbf16>, vector<32x128xbf16>, vector<64x128xf32> -> vector<64x128xf32>
    %23 = vector.extract_strided_slice %22 {offsets = [3, 0], sizes = [61, 128], strides = [1, 1]} : vector<64x128xf32> to vector<61x128xf32>
    %24 = vector.extract_strided_slice %22 {offsets = [0, 0], sizes = [3, 128], strides = [1, 1]} : vector<64x128xf32> to vector<3x128xf32>
    %25 = tpu.concatenate %23, %24 in 0 : vector<61x128xf32>, vector<3x128xf32> -> vector<64x128xf32>
    %26 = arith.addf %19, %25 : vector<64x128xf32>
    %c0_14 = arith.constant 0 : index
    %c0_15 = arith.constant 0 : index
    %27 = vector.load %arg3[%c0_14, %c0_15] : memref<1x128xf32, #tpu.memory_space<vmem>>, vector<1x128xf32>
    %28 = vector.broadcast %27 : vector<1x128xf32> to vector<64x128xf32>
    %29 = arith.addf %26, %28 : vector<64x128xf32>
    %cst_16 = arith.constant 0.000000e+00 : f32
    %30 = vector.broadcast %cst_16 : f32 to vector<64x128xf32>
    %31 = arith.maximumf %29, %30 : vector<64x128xf32>
    %32 = vector.shape_cast %31 : vector<64x128xf32> to vector<2x32x128xf32>
    %33 = tpu.iota {dimensions = array<i32: 1>} : vector<2x32x128xi32>
    %c0_17 = arith.constant 0 : index
    %c0_18 = arith.constant 0 : index
    %34 = vector.load %arg4[%c0_17, %c0_18] : memref<1x128xi32, #tpu.memory_space<vmem>>, vector<1x128xi32>
    %35 = vector.shape_cast %34 : vector<1x128xi32> to vector<1x1x128xi32>
    %36 = vector.broadcast %35 : vector<1x1x128xi32> to vector<2x32x128xi32>
    %37 = arith.cmpi slt, %33, %36 : vector<2x32x128xi32>
    %cst_19 = arith.constant -3.000000e+38 : f32
    %38 = vector.broadcast %cst_19 : f32 to vector<2x32x128xf32>
    %39 = arith.select %37, %32, %38 : vector<2x32x128xi1>, vector<2x32x128xf32>
    %c0_20 = arith.constant 0 : index
    %c0_21 = arith.constant 0 : index
    %c0_22 = arith.constant 0 : index
    %40 = vector.load %arg6[%c0_20, %c0_21, %c0_22] : memref<2x32x128xf32, #tpu.memory_space<vmem>>, vector<2x32x128xf32>
    tpu.vector_store %arg6[%c0_20, %c0_21, %c0_22], %39 {strides = array<i32>} : memref<2x32x128xf32, #tpu.memory_space<vmem>>, vector<2x32x128xf32>,
    %cst_23 = arith.constant -3.000000e+38 : f32
    %41 = vector.broadcast %cst_23 : f32 to vector<2x1x128xf32>
    %cst_24 = arith.constant -3.000000e+38 : f32
    %42 = vector.broadcast %cst_24 : f32 to vector<2x1x128xf32>
    %cst_25 = arith.constant -3.000000e+38 : f32
    %43 = vector.broadcast %cst_25 : f32 to vector<2x1x128xf32>
    %cst_26 = arith.constant -3.000000e+38 : f32
    %44 = vector.broadcast %cst_26 : f32 to vector<2x1x128xf32>
    %c0_i32 = arith.constant 0 : i32
    %c4_i32 = arith.constant 4 : i32
    %45 = arith.addi %c0_i32, %c4_i32 : i32
    %c1_i32 = arith.constant 1 : i32
    %46:4 = scf.for %arg7 = %c0_i32 to %45 step %c1_i32 iter_args(%arg8 = %41, %arg9 = %42, %arg10 = %43, %arg11 = %44) -> (vector<2x1x128xf32>, vector<2x1x128xf32>, vector<2x1x128xf32>, vector<2x1x128xf32>)  : i32 {
      %c8_i32 = arith.constant 8 : i32
      %49 = arith.muli %arg7, %c8_i32 : i32
      %50 = tpu.assume_multiple %49, 8 : i32
      %c0_31 = arith.constant 0 : index
      %51 = arith.index_cast %50 : i32 to index
      %c0_32 = arith.constant 0 : index
      %52 = vector.load %arg6[%c0_31, %51, %c0_32] : memref<2x32x128xf32, #tpu.memory_space<vmem>>, vector<2x8x128xf32>
      %53 = vector.extract_strided_slice %52 {offsets = [0, 0, 0], sizes = [2, 1, 128], strides = [1, 1, 1]} : vector<2x8x128xf32> to vector<2x1x128xf32>
      %54 = arith.maximumf %arg8, %53 : vector<2x1x128xf32>
      %55 = arith.minimumf %arg8, %53 : vector<2x1x128xf32>
      %56 = arith.maximumf %arg9, %55 : vector<2x1x128xf32>
      %57 = arith.minimumf %arg9, %55 : vector<2x1x128xf32>
      %58 = arith.maximumf %arg10, %57 : vector<2x1x128xf32>
      %59 = arith.minimumf %arg10, %57 : vector<2x1x128xf32>
      %60 = arith.maximumf %arg11, %59 : vector<2x1x128xf32>
      %61 = vector.extract_strided_slice %52 {offsets = [0, 1, 0], sizes = [2, 1, 128], strides = [1, 1, 1]} : vector<2x8x128xf32> to vector<2x1x128xf32>
      %62 = arith.maximumf %54, %61 : vector<2x1x128xf32>
      %63 = arith.minimumf %54, %61 : vector<2x1x128xf32>
      %64 = arith.maximumf %56, %63 : vector<2x1x128xf32>
      %65 = arith.minimumf %56, %63 : vector<2x1x128xf32>
      %66 = arith.maximumf %58, %65 : vector<2x1x128xf32>
      %67 = arith.minimumf %58, %65 : vector<2x1x128xf32>
      %68 = arith.maximumf %60, %67 : vector<2x1x128xf32>
      %69 = vector.extract_strided_slice %52 {offsets = [0, 2, 0], sizes = [2, 1, 128], strides = [1, 1, 1]} : vector<2x8x128xf32> to vector<2x1x128xf32>
      %70 = arith.maximumf %62, %69 : vector<2x1x128xf32>
      %71 = arith.minimumf %62, %69 : vector<2x1x128xf32>
      %72 = arith.maximumf %64, %71 : vector<2x1x128xf32>
      %73 = arith.minimumf %64, %71 : vector<2x1x128xf32>
      %74 = arith.maximumf %66, %73 : vector<2x1x128xf32>
      %75 = arith.minimumf %66, %73 : vector<2x1x128xf32>
      %76 = arith.maximumf %68, %75 : vector<2x1x128xf32>
      %77 = vector.extract_strided_slice %52 {offsets = [0, 3, 0], sizes = [2, 1, 128], strides = [1, 1, 1]} : vector<2x8x128xf32> to vector<2x1x128xf32>
      %78 = arith.maximumf %70, %77 : vector<2x1x128xf32>
      %79 = arith.minimumf %70, %77 : vector<2x1x128xf32>
      %80 = arith.maximumf %72, %79 : vector<2x1x128xf32>
      %81 = arith.minimumf %72, %79 : vector<2x1x128xf32>
      %82 = arith.maximumf %74, %81 : vector<2x1x128xf32>
      %83 = arith.minimumf %74, %81 : vector<2x1x128xf32>
      %84 = arith.maximumf %76, %83 : vector<2x1x128xf32>
      %85 = vector.extract_strided_slice %52 {offsets = [0, 4, 0], sizes = [2, 1, 128], strides = [1, 1, 1]} : vector<2x8x128xf32> to vector<2x1x128xf32>
      %86 = arith.maximumf %78, %85 : vector<2x1x128xf32>
      %87 = arith.minimumf %78, %85 : vector<2x1x128xf32>
      %88 = arith.maximumf %80, %87 : vector<2x1x128xf32>
      %89 = arith.minimumf %80, %87 : vector<2x1x128xf32>
      %90 = arith.maximumf %82, %89 : vector<2x1x128xf32>
      %91 = arith.minimumf %82, %89 : vector<2x1x128xf32>
      %92 = arith.maximumf %84, %91 : vector<2x1x128xf32>
      %93 = vector.extract_strided_slice %52 {offsets = [0, 5, 0], sizes = [2, 1, 128], strides = [1, 1, 1]} : vector<2x8x128xf32> to vector<2x1x128xf32>
      %94 = arith.maximumf %86, %93 : vector<2x1x128xf32>
      %95 = arith.minimumf %86, %93 : vector<2x1x128xf32>
      %96 = arith.maximumf %88, %95 : vector<2x1x128xf32>
      %97 = arith.minimumf %88, %95 : vector<2x1x128xf32>
      %98 = arith.maximumf %90, %97 : vector<2x1x128xf32>
      %99 = arith.minimumf %90, %97 : vector<2x1x128xf32>
      %100 = arith.maximumf %92, %99 : vector<2x1x128xf32>
      %101 = vector.extract_strided_slice %52 {offsets = [0, 6, 0], sizes = [2, 1, 128], strides = [1, 1, 1]} : vector<2x8x128xf32> to vector<2x1x128xf32>
      %102 = arith.maximumf %94, %101 : vector<2x1x128xf32>
      %103 = arith.minimumf %94, %101 : vector<2x1x128xf32>
      %104 = arith.maximumf %96, %103 : vector<2x1x128xf32>
      %105 = arith.minimumf %96, %103 : vector<2x1x128xf32>
      %106 = arith.maximumf %98, %105 : vector<2x1x128xf32>
      %107 = arith.minimumf %98, %105 : vector<2x1x128xf32>
      %108 = arith.maximumf %100, %107 : vector<2x1x128xf32>
      %109 = vector.extract_strided_slice %52 {offsets = [0, 7, 0], sizes = [2, 1, 128], strides = [1, 1, 1]} : vector<2x8x128xf32> to vector<2x1x128xf32>
      %110 = arith.maximumf %102, %109 : vector<2x1x128xf32>
      %111 = arith.minimumf %102, %109 : vector<2x1x128xf32>
      %112 = arith.maximumf %104, %111 : vector<2x1x128xf32>
      %113 = arith.minimumf %104, %111 : vector<2x1x128xf32>
      %114 = arith.maximumf %106, %113 : vector<2x1x128xf32>
      %115 = arith.minimumf %106, %113 : vector<2x1x128xf32>
      %116 = arith.maximumf %108, %115 : vector<2x1x128xf32>
      scf.yield %110, %112, %114, %116 : vector<2x1x128xf32>, vector<2x1x128xf32>, vector<2x1x128xf32>, vector<2x1x128xf32>
    }
    %c4_i32_27 = arith.constant 4 : i32
    %47 = tpu.concatenate %46#0, %46#1, %46#2, %46#3 in 1 : vector<2x1x128xf32>, vector<2x1x128xf32>, vector<2x1x128xf32>, vector<2x1x128xf32> -> vector<2x4x128xf32>
    %c0_28 = arith.constant 0 : index
    %c0_29 = arith.constant 0 : index
    %c0_30 = arith.constant 0 : index
    %48 = vector.load %arg5[%c0_28, %c0_29, %c0_30] : memref<2x4x128xf32, #tpu.memory_space<vmem>>, vector<2x4x128xf32>
    tpu.vector_store %arg5[%c0_28, %c0_29, %c0_30], %47 {strides = array<i32>} : memref<2x4x128xf32, #tpu.memory_space<vmem>>, vector<2x4x128xf32>,
    return
  }
  func.func @transform_0(%arg0: i32) -> (i32, i32) {
    %c0_i32 = arith.constant 0 : i32
    %c0_i32_0 = arith.constant 0 : i32
    return %arg0, %c0_i32 : i32, i32
  }
  func.func @transform_1(%arg0: i32) -> (i32, i32, i32) {
    %c0_i32 = arith.constant 0 : i32
    %c0_i32_0 = arith.constant 0 : i32
    %c0_i32_1 = arith.constant 0 : i32
    %c0_i32_2 = arith.constant 0 : i32
    return %c0_i32, %c0_i32_0, %c0_i32_1 : i32, i32, i32
  }
  func.func @transform_2(%arg0: i32) -> (i32, i32) {
    %c0_i32 = arith.constant 0 : i32
    %c0_i32_0 = arith.constant 0 : i32
    %c0_i32_1 = arith.constant 0 : i32
    return %c0_i32, %c0_i32_0 : i32, i32
  }
  func.func @transform_3(%arg0: i32) -> (i32, i32) {
    %c0_i32 = arith.constant 0 : i32
    %c0_i32_0 = arith.constant 0 : i32
    %c0_i32_1 = arith.constant 0 : i32
    return %c0_i32, %c0_i32_0 : i32, i32
  }
  func.func @transform_4(%arg0: i32) -> (i32, i32, i32) {
    %c0_i32 = arith.constant 0 : i32
    %c0_i32_0 = arith.constant 0 : i32
    %c0_i32_1 = arith.constant 0 : i32
    return %arg0, %c0_i32, %c0_i32_0 : i32, i32, i32
  }
}

</mosaic_0001>

<bundles_post_ra>
// kernel: tpu_custom_call.1
= control target key start
LH: loop header
LB: loop body
LE: loop exit
PB: predicated region body
PF: predicated region fallthrough
CT: control target
= control target key end

     0   :  { %6 = vsyncpa [#allocation3], 0  ;;  %s119_s0 = inlined_call_operand.hbm [shape: f32[16,128], index: 0, kind: input, shape index: {}]   ;;  %s120_s1 = inlined_call_operand.hbm [shape: f32[16,128], index: 1, kind: output, shape index: {}]  }
   0x1   :  { %7 = vsyncpa [#allocation4], 0  ;;  %s99_s6 = smov [#allocation2]  }
   0x2   :  { %s13_s7 = sshll.u32 %s99_s6, 4  ;;  %s14_s7 = int_to_ptr.vmem [resolvable:$true] %s13_s7 }
   0x3   :  { %s63_s8 = scalar_lea.vmem %s14_s7, 256  ;;  %p68_p1 = scmp.lt.s32.totalorder %s14_s7, %s14_s7 }
   0x4   :  { %p64_p0 = scmp.ne.s32.totalorder %s14_s7, %s63_s8  ;;  %p69_p2 = scmp.lt.s32.totalorder %s63_s8, %s63_s8 }
   0x6   :  { %p70_p3 = por %p69_p2, %p68_p1 }
   0x8   :  { %p71_p4 = pnand %p70_p3, %p64_p0 }
   0xa   :  { %74 = shalt.err (!%p71_p4)
}
   0xb   :  { %s100_s9 = smov 128   ;;  %s101_s10 = smov 8  }
   0xc   :  { %19 = dma.hbm_to_vmem [thread:$0]  %s119_s0, 256, %s14_s7, [#allocation3], %s100_s9, %s100_s9, %s101_s10  }
   0xd   :  { %95 = dma.done.wait [#allocation3], 256  }
   0xe   :  { %96 = vsyncadd [#allocation3], 4294967040  ;;  %v27_v0 = vlaneseq  ;;  %s102_s13 = smov [#allocation5]   ;;  %v23_v2 = vld [vmem:[#allocation2] sm:$0xff]  ;;  %v24_v3 = vld [vmem:[#allocation2 + $0x8] sm:$0xff] }
   0xf   :  { %s39_s14 = sshll.u32 %s102_s13, 4  ;;  %v25_v4 = vrot.slane %v23_v2, 7  ;;  %v26_v5 = vrot.slane %v24_v3, 7  ;;  %s40_s14 = int_to_ptr.vmem [resolvable:$true] %s39_s14 }
  0x10   :  { %v28_v1 = vshrl.u32 %v27_v0, 7  ;;  %s75_s15 = scalar_lea.vmem %s40_s14, 256  ;;  %p80_p6 = scmp.lt.s32.totalorder %s40_s14, %s40_s14 }
  0x11   :  { %p76_p5 = scmp.ne.s32.totalorder %s40_s14, %s75_s15  ;;  %p81_p7 = scmp.lt.s32.totalorder %s75_s15, %s75_s15 }
  0x12   :  { %vm29_vm0 = vcmp.lt.s32.totalorder %v28_v1, 1 }
  0x13   :  { %v31_v6 = vsel %vm29_vm0, %v26_v5, %v25_v4  ;;  %v30_v7 = vsel %vm29_vm0, %v25_v4, %v26_v5  ;;  %p82_p8 = por %p81_p7, %p80_p6 }
  0x14   :  { %32 = vst [vmem:[#allocation5] sm:$0xff] %v31_v6  ;;  %33 = vst [vmem:[#allocation5 + $0x8] sm:$0xff] %v30_v7 }
  0x15   :  { %p83_p9 = pnand %p82_p8, %p76_p5 }
  0x17   :  { %86 = shalt.err (!%p83_p9)
}
  0x18   :  { %45 = dma.vmem_to_hbm [thread:$0]  %s40_s14, 256, %s120_s1, [#allocation4], %s100_s9, %s100_s9, %s101_s10  }
  0x19   :  { %97 = dma.done.wait [#allocation4], 256  }
  0x1a   :  { %98 = vsyncadd [#allocation4], 4294967040 }
  0x1b   :  { %49 = vsyncpa [#allocation3], 1 }
  0x1c   :  { %50 = vsyncpa [#allocation4], 1 }

// kernel: fused_conv_relu_topk.1
= control target key start
LH: loop header
LB: loop body
LE: loop exit
PB: predicated region body
PF: predicated region fallthrough
CT: control target
= control target key end

     0   :  { %vm67_vm0 = vcmask 261120   ;;  %v527_v22 = vlaneseq  ;;  %vm153_vm1 = vcmask 1046528   ;;  %vm346_vm2 = vcmask 1045504   ;;  %s1306_s1 = inlined_call_operand.vmem [shape: bf16[4,32,128], index: 1, kind: input, shape index: {}]   ;;  %s1307_s4 = inlined_call_operand.vmem [shape: f32[2,4,128], index: 4, kind: output, shape index: {}]   ;;  %s1308_s0 = inlined_call_operand.vmem [shape: bf16[64,32], index: 0, kind: input, shape index: {}]   ;;  %s1309_s3 = inlined_call_operand.vmem [shape: s32[1,128], index: 3, kind: input, shape index: {}]   ;;  %s1310_s2 = inlined_call_operand.vmem [shape: f32[1,128], index: 2, kind: input, shape index: {}]  }
   0x1   :  { %v968_v0 = vld [vmem:[%s1306_s1 + $0x18] sm:$0xff]   ;;  %v969_v1 = vld [vmem:[%s1306_s1 + $0x8] sm:$0xff]   ;;  %v970_v2 = vld [vmem:[%s1306_s1 + $0x10] sm:$0xff]   ;;  %vm470_vm3 = vcmask 1044480  }
   0x2   :  { %848 = vmatprep.subr.bf16.mxu0 %v968_v0  ;;  %860 = vmatprep.subr.bf16.mxu1 %v969_v1  ;;  %v971_v3 = vld [vmem:[%s1306_s1] sm:$0xff]   ;;  %v973_v5 = vld [vmem:[%s1308_s0 + $0x8] sm:$0xff]   ;;  %v975_v7 = vld [vmem:[%s1306_s1 + $0x38] sm:$0xff]   ;;  %v1133_v28 = vshrl.u32 %v527_v22, 7 }
   0x3   :  { %849 = vmatpush3.bf16.msra.mxu0 %v968_v0  ;;  %861 = vmatpush3.bf16.msra.mxu1 %v969_v1  ;;  %v972_v4 = vld [vmem:[%s1308_s0] sm:$0xff]   ;;  %v974_v6 = vld [vmem:[%s1306_s1 + $0x28] sm:$0xff]   ;;  %v976_v8 = vld [vmem:[%s1308_s0 + $0x10] sm:$0xff]  }
   0x4   :  { %850 = vmatprep.subr.bf16.mxu0 %v970_v2  ;;  %862 = vmatprep.subr.bf16.mxu1 %v971_v3  ;;  %v978_v9 = vld [vmem:[%s1306_s1 + $0x20] sm:$0xff]   ;;  %v979_v10 = vld [vmem:[%s1306_s1 + $0x30] sm:$0xff]   ;;  %v977_v11 = vld [vmem:[%s1308_s0 + $0x18] sm:$0xff]   ;;  %v1140_v40 = vadd.s32 16, %v1133_v28  ;;  %v1156_v48 = vadd.s32 8, %v1133_v28  ;;  %v1159_v52 = vadd.s32 24, %v1133_v28 }
   0x5   :  { %852 = vmatprep.mubr.msk.bf16.mxu0 %vm67_vm0, %v972_v4  ;;  %864 = vmatprep.mubr.msk.bf16.mxu1 %vm67_vm0, %v972_v4  ;;  %v1148_v43 = vld [vmem:[%s1309_s3] ss:$0 sm:$0xff] }
   0x6   :  { %vm539_vm4 = vcmp.lt.s32.totalorder %v1140_v40, %v1148_v43  ;;  %vm537_vm5 = vcmp.lt.s32.totalorder %v1133_v28, %v1148_v43  ;;  %vm538_vm6 = vcmp.lt.s32.totalorder %v1156_v48, %v1148_v43  ;;  %vm540_vm7 = vcmp.lt.s32.totalorder %v1159_v52, %v1148_v43 }
   0x7   :  { %851 = vmatpush3.bf16.msra.mxu0 %v970_v2  ;;  %863 = vmatpush3.bf16.msra.mxu1 %v971_v3  ;;  %v1229_v52 = vmov -3e+38   ;;  %v1241_v28 = vmov -3e+38  }
   0x8   :  { %872 = vmatprep.subr.bf16.mxu0 %v974_v6  ;;  %884 = vmatprep.subr.bf16.mxu1 %v975_v7 }
   0xa   :  { %853 = vmatmul.mubr.msk.bf16.vlgmr.msra.gmra.mxu0 %vm67_vm0, %v973_v5  ;;  %865 = vmatmul.mubr.msk.bf16.vlgmr.msra.gmra.mxu1 %vm67_vm0, %v973_v5 }
   0xb   :  { %873 = vmatpush3.bf16.msra.mxu0 %v974_v6  ;;  %885 = vmatpush3.bf16.msra.mxu1 %v975_v7 }
   0xc   :  { %856 = vmatprep.mubr.msk.bf16.mxu0 %vm67_vm0, %v976_v8  ;;  %868 = vmatprep.mubr.msk.bf16.mxu1 %vm67_vm0, %v976_v8 }
   0xd   :  { %874 = vmatprep.subr.bf16.mxu0 %v978_v9  ;;  %886 = vmatprep.subr.bf16.mxu1 %v979_v10 }
   0xf   :  { %875 = vmatpush3.bf16.msra.mxu0 %v978_v9  ;;  %887 = vmatpush3.bf16.msra.mxu1 %v979_v10 }
  0x12   :  { %857 = vmatmul.mubr.msk.bf16.gmra.mxu0 %vm67_vm0, %v977_v11  ;;  %869 = vmatmul.mubr.msk.bf16.gmra.mxu1 %vm67_vm0, %v977_v11 }
  0x13   :  { %876 = vmatprep.mubr.msk.bf16.mxu0 %vm67_vm0, %v972_v4  ;;  %888 = vmatprep.mubr.msk.bf16.mxu1 %vm67_vm0, %v972_v4 }
  0x1a   :  { %877 = vmatmul.mubr.msk.bf16.vlgmr.msra.gmra.mxu0 %vm67_vm0, %v973_v5  ;;  %889 = vmatmul.mubr.msk.bf16.vlgmr.msra.gmra.mxu1 %vm67_vm0, %v973_v5 }
  0x1b   :  { %880 = vmatprep.mubr.msk.bf16.mxu0 %vm67_vm0, %v976_v8  ;;  %892 = vmatprep.mubr.msk.bf16.mxu1 %vm67_vm0, %v976_v8 }
  0x22   :  { %881 = vmatmul.mubr.msk.bf16.gmra.mxu0 %vm67_vm0, %v977_v11  ;;  %893 = vmatmul.mubr.msk.bf16.gmra.mxu1 %vm67_vm0, %v977_v11  ;;  %v1176_v11 = vld [vmem:[%s1310_s2] ss:$0 sm:$0xff]  ;;  %s1245_s2 = smov 0  }
  0xca   :  { %v854_v12 = vpop.f32.mrf.mxu0  ;;  %v866_v13 = vpop.f32.mrf.mxu1 }
  0xcb   :  { %v157_v31 = vrot.slane %v854_v12, 1 }
  0xcc   :  { %v114_v14 = vpop.f32.mrf.mxu0  ;;  %v225_v15 = vpop.f32.mrf.mxu1 }
  0xcd   :  { %v154_v35 = vrot.slane %v114_v14, 1 }
  0xce   :  { %v855_v16 = vpop.f32.mrf.mxu0  ;;  %v867_v17 = vpop.f32.mrf.mxu1 }
  0xcf   :  { %v159_v26 = vrot.slane %v855_v16, 1 }
  0xd0   :  { %v117_v18 = vpop.f32.mrf.mxu0  ;;  %v228_v19 = vpop.f32.mrf.mxu1 }
  0xd1   :  { %v155_v29 = vrot.slane %v117_v18, 1  ;;  %v160_v37 = vsel %vm153_vm1, %v157_v31, %v159_v26 }
  0xd2   :  { %v1129_v20 = vpop.f32.mrf.mxu0  ;;  %v870_v21 = vpop.f32.mrf.mxu1  ;;  %v234_v49 = vadd.f32 %v866_v13, %v160_v37 }
  0xd3   :  { %v165_v38 = vrot.slane %v1129_v20, 1  ;;  %v156_v41 = vsel %vm153_vm1, %v154_v35, %v155_v29  ;;  %v158_v44 = vsel %vm153_vm1, %v155_v29, %v157_v31 }
  0xd4   :  { %v130_v23 = vpop.f32.mrf.mxu0  ;;  %v1131_v24 = vpop.f32.mrf.mxu1  ;;  %v226_v53 = vadd.f32 %v225_v15, %v156_v41  ;;  %v229_v58 = vadd.f32 %v228_v19, %v158_v44 }
  0xd5   :  { %v161_v32 = vrot.slane %v130_v23, 1 }
  0xd6   :  { %v859_v25 = vpop.f32.mrf.mxu0  ;;  %v871_v27 = vpop.f32.mrf.mxu1 }
  0xd7   :  { %v167_v33 = vrot.slane %v859_v25, 1  ;;  %v162_v45 = vsel %vm153_vm1, %v159_v26, %v161_v32 }
  0xd8   :  { %v133_v30 = vpop.f32.mrf.mxu0  ;;  %v1135_v34 = vpop.f32.mrf.mxu1  ;;  %v237_v59 = vadd.f32 %v867_v17, %v162_v45 }
  0xd9   :  { %v168_v46 = vsel %vm153_vm1, %v165_v38, %v167_v33  ;;  %v163_v50 = vrot.slane %v133_v30, 1  ;;  %v178_v54 = vsel %vm153_vm1, %v167_v33, %v154_v35 }
  0xda   :  { %v878_v36 = vpop.f32.mrf.mxu0  ;;  %v890_v39 = vpop.f32.mrf.mxu1  ;;  %v250_v60 = vadd.f32 %v870_v21, %v168_v46  ;;  %v253_v4 = vadd.f32 %v871_v27, %v178_v54 }
  0xdb   :  { %v350_v55 = vrot.slane %v878_v36, 2  ;;  %v474_v63 = vrot.slane %v890_v39, 3  ;;  %v164_v5 = vsel %vm153_vm1, %v161_v32, %v163_v50  ;;  %v166_v15 = vsel %vm153_vm1, %v163_v50, %v165_v38 }
  0xdc   :  { %v1143_v42 = vpop.f32.mrf.mxu0  ;;  %v1153_v47 = vpop.f32.mrf.mxu1  ;;  %v242_v20 = vadd.f32 %v1131_v24, %v164_v5 }
  0xdd   :  { %v347_v0 = vrot.slane %v1143_v42, 2  ;;  %v471_v9 = vrot.slane %v1153_v47, 3 }
  0xde   :  { %v879_v51 = vpop.f32.mrf.mxu0  ;;  %v891_v57 = vpop.f32.mrf.mxu1 }
  0xdf   :  { %v352_v56 = vrot.slane %v879_v51, 2  ;;  %v476_v61 = vrot.slane %v891_v57, 3 }
  0xe0   :  { %v310_v62 = vpop.f32.mrf.mxu0  ;;  %v434_v3 = vpop.f32.mrf.mxu1 }
  0xe1   :  { %v353_v1 = vsel %vm346_vm2, %v350_v55, %v352_v56  ;;  %v348_v2 = vrot.slane %v310_v62, 2  ;;  %v472_v7 = vrot.slane %v434_v3, 3  ;;  %v477_v10 = vsel %vm470_vm3, %v474_v63, %v476_v61 }
  0xe2   :  { %v374_v6 = vadd.f32 %v353_v1, %v234_v49  ;;  %v882_v8 = vpop.f32.mrf.mxu0  ;;  %v894_v14 = vpop.f32.mrf.mxu1 }
  0xe3   :  { %v349_v12 = vsel %vm346_vm2, %v347_v0, %v348_v2  ;;  %v351_v13 = vsel %vm346_vm2, %v348_v2, %v350_v55  ;;  %v473_v21 = vsel %vm470_vm3, %v471_v9, %v472_v7  ;;  %v475_v22 = vsel %vm470_vm3, %v472_v7, %v474_v63 }
  0xe4   :  { %v498_v16 = vadd.f32 %v477_v10, %v374_v6  ;;  %v372_v17 = vadd.f32 %v349_v12, %v226_v53  ;;  %v373_v18 = vadd.f32 %v351_v13, %v229_v58  ;;  %v323_v19 = vpop.f32.mrf.mxu0  ;;  %v447_v25 = vpop.f32.mrf.mxu1  ;;  %v358_v32 = vrot.slane %v882_v8, 2 }
  0xe5   :  { %v354_v23 = vrot.slane %v323_v19, 2  ;;  %v478_v30 = vrot.slane %v447_v25, 3  ;;  %v482_v33 = vrot.slane %v894_v14, 3  ;;  %v1231_v25 = vmov -3e+38  }
  0xe6   :  { %v513_v26 = vadd.f32 %v1176_v11, %v498_v16  ;;  %v496_v27 = vadd.f32 %v473_v21, %v372_v17  ;;  %v497_v29 = vadd.f32 %v475_v22, %v373_v18  ;;  %v883_v31 = vpop.f32.mrf.mxu0  ;;  %v895_v36 = vpop.f32.mrf.mxu1 }
  0xe7   :  { %v355_v35 = vsel %vm346_vm2, %v352_v56, %v354_v23  ;;  %v360_v24 = vrot.slane %v883_v31, 2  ;;  %v479_v42 = vsel %vm470_vm3, %v476_v61, %v478_v30  ;;  %v484_v46 = vrot.slane %v895_v36, 3 }
  0xe8   :  { %v521_v37 = vmax.f32 %v513_v26, 0.0  ;;  %v511_v38 = vadd.f32 %v1176_v11, %v496_v27  ;;  %v512_v39 = vadd.f32 %v1176_v11, %v497_v29  ;;  %v375_v41 = vadd.f32 %v355_v35, %v237_v59  ;;  %v326_v47 = vpop.f32.mrf.mxu0  ;;  %v450_v54 = vpop.f32.mrf.mxu1 }
  0xe9   :  { %v361_v44 = vsel %vm346_vm2, %v358_v32, %v360_v24  ;;  %v371_v45 = vsel %vm346_vm2, %v360_v24, %v347_v0  ;;  %v485_v57 = vsel %vm470_vm3, %v482_v33, %v484_v46  ;;  %v495_v58 = vsel %vm470_vm3, %v484_v46, %v471_v9 }
  0xea   :  { %v543_v49 = vsel %vm539_vm4, %v521_v37, -3e+38  ;;  %v519_v50 = vmax.f32 %v511_v38, 0.0  ;;  %v520_v51 = vmax.f32 %v512_v39, 0.0  ;;  %v499_v53 = vadd.f32 %v479_v42, %v375_v41 }
  0xeb   :  { %551 = vst [vmem:[#allocation2 + $0x10] sm:$0xff] %v543_v49  ;;  %v378_v55 = vadd.f32 %v361_v44, %v250_v60  ;;  %v379_v56 = vadd.f32 %v371_v45, %v253_v4  ;;  %v356_v63 = vrot.slane %v326_v47, 2  ;;  %v245_v0 = vadd.f32 %v1135_v34, %v166_v15 }
  0xec   :  { %v541_v59 = vsel %vm537_vm5, %v519_v50, -3e+38  ;;  %v542_v61 = vsel %vm538_vm6, %v520_v51, -3e+38  ;;  %v514_v62 = vadd.f32 %v1176_v11, %v499_v53  ;;  %v480_v2 = vrot.slane %v450_v54, 3 }
  0xed   :  { %549 = vst [vmem:[#allocation2] sm:$0xff] %v541_v59  ;;  %550 = vst [vmem:[#allocation2 + $0x8] sm:$0xff] %v542_v61  ;;  %v502_v60 = vadd.f32 %v485_v57, %v378_v55  ;;  %v503_v1 = vadd.f32 %v495_v58, %v379_v56  ;;  %v357_v4 = vsel %vm346_vm2, %v354_v23, %v356_v63  ;;  %v1233_v26 = vmov -3e+38  }
  0xee   :  { %v522_v3 = vmax.f32 %v514_v62, 0.0  ;;  %v359_v5 = vsel %vm346_vm2, %v356_v63, %v358_v32  ;;  %v376_v8 = vadd.f32 %v357_v4, %v242_v20  ;;  %v481_v10 = vsel %vm470_vm3, %v478_v30, %v480_v2 }
  0xef   :  { %v517_v6 = vadd.f32 %v1176_v11, %v502_v60  ;;  %v518_v7 = vadd.f32 %v1176_v11, %v503_v1  ;;  %v377_v9 = vadd.f32 %v359_v5, %v245_v0  ;;  %v483_v12 = vsel %vm470_vm3, %v480_v2, %v482_v33 }
  0xf0   :  { %v544_v34 = vsel %vm540_vm7, %v522_v3, -3e+38  ;;  %v500_v15 = vadd.f32 %v481_v10, %v376_v8  ;;  %v1237_v27 = vmov -3e+38   ;;  %v1239_v29 = vmov -3e+38  }
  0xf1   :  { %552 = vst [vmem:[#allocation2 + $0x18] sm:$0xff] %v544_v34  ;;  %v525_v13 = vmax.f32 %v517_v6, 0.0  ;;  %v526_v14 = vmax.f32 %v518_v7, 0.0  ;;  %v501_v16 = vadd.f32 %v483_v12, %v377_v9  ;;  %v1243_v30 = vmov -3e+38  }
  0xf2   :  { %v515_v19 = vadd.f32 %v1176_v11, %v500_v15 }
  0xf3   :  { %v547_v17 = vsel %vm539_vm4, %v525_v13, -3e+38  ;;  %v548_v18 = vsel %vm540_vm7, %v526_v14, -3e+38  ;;  %v516_v20 = vadd.f32 %v1176_v11, %v501_v16  ;;  %v1235_v11 = vmov -3e+38  }
  0xf4   :  { %555 = vst [vmem:[#allocation2 + $0x30] sm:$0xff] %v547_v17  ;;  %556 = vst [vmem:[#allocation2 + $0x38] sm:$0xff] %v548_v18  ;;  %v523_v21 = vmax.f32 %v515_v19, 0.0 }
  0xf5   :  { %v524_v22 = vmax.f32 %v516_v20, 0.0 }
  0xf6   :  { %v545_v23 = vsel %vm537_vm5, %v523_v21, -3e+38 }
  0xf7   :  { %v546_v40 = vsel %vm538_vm6, %v524_v22, -3e+38  ;;  %553 = vst [vmem:[#allocation2 + $0x20] sm:$0xff] %v545_v23 }
  0xf8   :  { %554 = vst [vmem:[#allocation2 + $0x28] sm:$0xff] %v546_v40 }
  0xf9 LB: > { %s823_s14 = sshll.u32 %s1050_s2, 3  ;;  %s562_s2 = sadd.s32 1, %s1050_s2   ;;  %s1050_s2 = sphi %s1245_s2, %s562_s2   ;;  %v1046_v30 = vphi %v1243_v30, %v1318_v30   ;;  %v1042_v28 = vphi %v1241_v28, %v1317_v28   ;;  %v1038_v29 = vphi %v1239_v29, %v1316_v29   ;;  %v1034_v27 = vphi %v1237_v27, %v1315_v27   ;;  %v1030_v11 = vphi %v1235_v11, %v1314_v11   ;;  %v1026_v26 = vphi %v1233_v26, %v1313_v26   ;;  %v1022_v25 = vphi %v1231_v25, %v1312_v25   ;;  %v1018_v52 = vphi %v1229_v52, %v1311_v52  }
  0xfa   : > { %s572_s15 = scalar_lea.vmem [#allocation2], %s823_s14  ;;  %p559_p0 = scmp.ge.s32.totalorder %s562_s2, 4  }
  0xfb   :  { %vm735_vm8 = vcmask (%p559_p0), 1040384   ;;  %vm738_vm9 = vcmask (%p559_p0), 1041408   ;;  %vm741_vm10 = vcmask (%p559_p0), 1042432  }
  0xff   : > { %v1259_v43 = vld [vmem:[%s572_s15] sm:$0xff] }
 0x100   : > { %v1261_v48 = vld [vmem:[%s572_s15 + $0x20] sm:$0xff]  ;;  %v575_v31 = vmax.f32 %v1046_v30, %v1259_v43  ;;  %v577_v33 = vmin.f32 %v1046_v30, %v1259_v43  ;;  %v591_v24 = vrot.slane %v1259_v43, 1  ;;  %v609_v37 = vrot.slane %v1259_v43, 2 }
 0x101   : > { %v576_v32 = vmax.f32 %v1042_v28, %v1261_v48  ;;  %v578_v35 = vmin.f32 %v1042_v28, %v1261_v48  ;;  %v592_v36 = vrot.slane %v1261_v48, 1  ;;  %v610_v38 = vrot.slane %v1261_v48, 2 }
 0x102   : > { %v579_v39 = vmax.f32 %v1038_v29, %v577_v33  ;;  %v581_v42 = vmin.f32 %v1038_v29, %v577_v33  ;;  %v595_v45 = vmax.f32 %v575_v31, %v591_v24  ;;  %v597_v47 = vmin.f32 %v575_v31, %v591_v24 }
 0x103   : > { %v580_v41 = vmax.f32 %v1034_v27, %v578_v35  ;;  %v582_v44 = vmin.f32 %v1034_v27, %v578_v35  ;;  %v596_v46 = vmax.f32 %v576_v32, %v592_v36  ;;  %v598_v49 = vmin.f32 %v576_v32, %v592_v36 }
 0x104   : > { %v583_v50 = vmax.f32 %v1030_v11, %v581_v42  ;;  %v585_v53 = vmin.f32 %v1030_v11, %v581_v42  ;;  %v599_v55 = vmax.f32 %v579_v39, %v597_v47  ;;  %v601_v57 = vmin.f32 %v579_v39, %v597_v47 }
 0x105   : > { %v584_v51 = vmax.f32 %v1026_v26, %v582_v44  ;;  %v586_v54 = vmin.f32 %v1026_v26, %v582_v44  ;;  %v600_v56 = vmax.f32 %v580_v41, %v598_v49  ;;  %v602_v58 = vmin.f32 %v580_v41, %v598_v49 }
 0x106   : > { %v587_v59 = vmax.f32 %v1022_v25, %v585_v53  ;;  %v613_v62 = vmax.f32 %v595_v45, %v609_v37  ;;  %v614_v63 = vmax.f32 %v596_v46, %v610_v38  ;;  %v603_v0 = vmax.f32 %v583_v50, %v601_v57 }
 0x107   : > { %v588_v61 = vmax.f32 %v1018_v52, %v586_v54  ;;  %v604_v60 = vmax.f32 %v584_v51, %v602_v58  ;;  %v605_v1 = vmin.f32 %v583_v50, %v601_v57  ;;  %v606_v2 = vmin.f32 %v584_v51, %v602_v58 }
 0x108   : > { %v615_v3 = vmin.f32 %v595_v45, %v609_v37  ;;  %v616_v4 = vmin.f32 %v596_v46, %v610_v38  ;;  %v627_v5 = vrot.slane %v1259_v43, 3  ;;  %v628_v6 = vrot.slane %v1261_v48, 3 }
 0x109   : > { %v607_v7 = vmax.f32 %v587_v59, %v605_v1  ;;  %v608_v8 = vmax.f32 %v588_v61, %v606_v2  ;;  %v645_v9 = vrot.slane %v1259_v43, 4  ;;  %v646_v34 = vrot.slane %v1261_v48, 4 }
 0x10a   : > { %v617_v10 = vmax.f32 %v599_v55, %v615_v3  ;;  %v618_v12 = vmax.f32 %v600_v56, %v616_v4  ;;  %v619_v13 = vmin.f32 %v599_v55, %v615_v3  ;;  %v620_v14 = vmin.f32 %v600_v56, %v616_v4 }
 0x10b   : > { %v631_v15 = vmax.f32 %v613_v62, %v627_v5  ;;  %v632_v16 = vmax.f32 %v614_v63, %v628_v6  ;;  %v633_v17 = vmin.f32 %v613_v62, %v627_v5  ;;  %v634_v18 = vmin.f32 %v614_v63, %v628_v6 }
 0x10c   : > { %v621_v19 = vmax.f32 %v603_v0, %v619_v13  ;;  %v622_v20 = vmax.f32 %v604_v60, %v620_v14  ;;  %v623_v21 = vmin.f32 %v603_v0, %v619_v13  ;;  %v624_v22 = vmin.f32 %v604_v60, %v620_v14 }
 0x10d   : > { %v635_v23 = vmax.f32 %v617_v10, %v633_v17  ;;  %v636_v40 = vmax.f32 %v618_v12, %v634_v18  ;;  %v637_v52 = vmin.f32 %v617_v10, %v633_v17  ;;  %v638_v25 = vmin.f32 %v618_v12, %v634_v18 }
 0x10e   : > { %v625_v26 = vmax.f32 %v607_v7, %v623_v21  ;;  %v626_v11 = vmax.f32 %v608_v8, %v624_v22  ;;  %v649_v27 = vmax.f32 %v631_v15, %v645_v9  ;;  %v650_v29 = vmax.f32 %v632_v16, %v646_v34 }
 0x10f   : > { %v639_v28 = vmax.f32 %v621_v19, %v637_v52  ;;  %v640_v30 = vmax.f32 %v622_v20, %v638_v25  ;;  %v641_v31 = vmin.f32 %v621_v19, %v637_v52  ;;  %v642_v32 = vmin.f32 %v622_v20, %v638_v25 }
 0x110   : > { %v651_v33 = vmin.f32 %v631_v15, %v645_v9  ;;  %v652_v35 = vmin.f32 %v632_v16, %v646_v34  ;;  %v663_v24 = vrot.slane %v1259_v43, 5  ;;  %v664_v36 = vrot.slane %v1261_v48, 5 }
 0x111   : > { %v643_v37 = vmax.f32 %v625_v26, %v641_v31  ;;  %v644_v38 = vmax.f32 %v626_v11, %v642_v32  ;;  %v681_v39 = vrot.slane %v1259_v43, 6  ;;  %v682_v41 = vrot.slane %v1261_v48, 6 }
 0x112   : > { %v653_v42 = vmax.f32 %v635_v23, %v651_v33  ;;  %v654_v44 = vmax.f32 %v636_v40, %v652_v35  ;;  %v655_v45 = vmin.f32 %v635_v23, %v651_v33  ;;  %v656_v46 = vmin.f32 %v636_v40, %v652_v35 }
 0x113   : > { %v667_v47 = vmax.f32 %v649_v27, %v663_v24  ;;  %v668_v49 = vmax.f32 %v650_v29, %v664_v36  ;;  %v669_v50 = vmin.f32 %v649_v27, %v663_v24  ;;  %v670_v51 = vmin.f32 %v650_v29, %v664_v36 }
 0x114   : > { %v657_v53 = vmax.f32 %v639_v28, %v655_v45  ;;  %v658_v54 = vmax.f32 %v640_v30, %v656_v46  ;;  %v659_v55 = vmin.f32 %v639_v28, %v655_v45  ;;  %v660_v56 = vmin.f32 %v640_v30, %v656_v46 }
 0x115   : > { %v671_v57 = vmax.f32 %v653_v42, %v669_v50  ;;  %v672_v58 = vmax.f32 %v654_v44, %v670_v51  ;;  %v673_v59 = vmin.f32 %v653_v42, %v669_v50  ;;  %v674_v61 = vmin.f32 %v654_v44, %v670_v51 }
 0x116   : > { %v661_v62 = vmax.f32 %v643_v37, %v659_v55  ;;  %v662_v63 = vmax.f32 %v644_v38, %v660_v56  ;;  %v685_v0 = vmax.f32 %v667_v47, %v681_v39  ;;  %v686_v60 = vmax.f32 %v668_v49, %v682_v41 }
 0x117   : > { %v675_v1 = vmax.f32 %v657_v53, %v673_v59  ;;  %v676_v2 = vmax.f32 %v658_v54, %v674_v61  ;;  %v677_v3 = vmin.f32 %v657_v53, %v673_v59  ;;  %v678_v4 = vmin.f32 %v658_v54, %v674_v61 }
 0x118   : > { %v687_v5 = vmin.f32 %v667_v47, %v681_v39  ;;  %v688_v6 = vmin.f32 %v668_v49, %v682_v41  ;;  %v699_v7 = vrot.slane %v1259_v43, 7  ;;  %v700_v8 = vrot.slane %v1261_v48, 7 }
 0x119   : > { %v679_v9 = vmax.f32 %v661_v62, %v677_v3  ;;  %v680_v34 = vmax.f32 %v662_v63, %v678_v4 }
 0x11a   : > { %v689_v10 = vmax.f32 %v671_v57, %v687_v5  ;;  %v690_v12 = vmax.f32 %v672_v58, %v688_v6  ;;  %v691_v13 = vmin.f32 %v671_v57, %v687_v5  ;;  %v692_v14 = vmin.f32 %v672_v58, %v688_v6 }
 0x11b   : > { %v703_v15 = vmax.f32 %v685_v0, %v699_v7   ;;  %v704_v16 = vmax.f32 %v686_v60, %v700_v8   ;;  %v705_v17 = vmin.f32 %v685_v0, %v699_v7  ;;  %v706_v18 = vmin.f32 %v686_v60, %v700_v8 }
 0x11c   : > { %v693_v19 = vmax.f32 %v675_v1, %v691_v13  ;;  %v694_v20 = vmax.f32 %v676_v2, %v692_v14  ;;  %v695_v21 = vmin.f32 %v675_v1, %v691_v13  ;;  %v696_v22 = vmin.f32 %v676_v2, %v692_v14 }
 0x11d   : > { %v707_v23 = vmax.f32 %v689_v10, %v705_v17   ;;  %v708_v40 = vmax.f32 %v690_v12, %v706_v18   ;;  %v709_v52 = vmin.f32 %v689_v10, %v705_v17  ;;  %v710_v43 = vmin.f32 %v690_v12, %v706_v18 }
 0x11e   : > { %v697_v25 = vmax.f32 %v679_v9, %v695_v21  ;;  %v698_v48 = vmax.f32 %v680_v34, %v696_v22  ;;  %v1317_v28 = vmov %v704_v16  ;;  %v1318_v30 = vmov %v703_v15 }
 0x11f   : > { %v711_v31 = vmax.f32 %v693_v19, %v709_v52   ;;  %v712_v32 = vmax.f32 %v694_v20, %v710_v43   ;;  %v713_v26 = vmin.f32 %v693_v19, %v709_v52  ;;  %v714_v11 = vmin.f32 %v694_v20, %v710_v43  ;;  %561 = sbr.rel (!%p559_p0) target bundleno = 249 (0xf9), region = 47 }
 0x120   : > { %v1315_v27 = vmov %v708_v40  ;;  %v1316_v29 = vmov %v707_v23  ;;  %v719_v30 = vrot.slane (%p559_p0), %v707_v23, 7  ;;  %v720_v37 = vrot.slane (%p559_p0), %v708_v40, 7 }
 0x121   : > { %v715_v33 = vmax.f32 %v697_v25, %v713_v26   ;;  %v716_v35 = vmax.f32 %v698_v48, %v714_v11   ;;  %v1313_v26 = vmov %v712_v32  ;;  %v1314_v11 = vmov %v711_v31 }
 0x122   :  { %v725_v24 = vrot.slane (%p559_p0), %v711_v31, 6  ;;  %v726_v38 = vrot.slane (%p559_p0), %v712_v32, 6  ;;  %v736_v39 = vsel (%p559_p0), %vm735_vm8, %v703_v15, %v719_v30  ;;  %v737_v44 = vsel (%p559_p0), %vm735_vm8, %v704_v16, %v720_v37 }
 0x123   : > { %v1311_v52 = vmov %v716_v35  ;;  %v1312_v25 = vmov %v715_v33  ;;  %v731_v36 = vrot.slane (%p559_p0), %v715_v33, 5  ;;  %v732_v41 = vrot.slane (%p559_p0), %v716_v35, 5 }
 0x124   :  { %v739_v42 = vsel %vm738_vm9, %v736_v39, %v725_v24  ;;  %v740_v46 = vsel %vm738_vm9, %v737_v44, %v726_v38 }
 0x125   :  { %v742_v45 = vsel %vm741_vm10, %v739_v42, %v731_v36  ;;  %v743_v47 = vsel %vm741_vm10, %v740_v46, %v732_v41 }
 0x126   :  { %744 = vst [vmem:[%s1307_s4] sm:$0xf] %v742_v45  ;;  %745 = vst [vmem:[%s1307_s4 + $0x4] sm:$0xf] %v743_v47 }

</bundles_post_ra>
